<compile_context>
chip_gen: v7x
topology: tpu7x:2x2x1
jax: 0.10.0
libtpu: 0.0.40
codegen_flags: <defaults>
</compile_context>

<pallas_src>
import jax
import jax.numpy as jnp
from jax.experimental import pallas as pl
from jax.experimental.pallas import tpu as pltpu


# -----------------------------------------------------------------------------
# Primary path: aliased no-op (zero data movement inside the kernel).
# -----------------------------------------------------------------------------
def _identity_noop_kernel(x_ref, o_ref):
    # Output buffer is aliased onto the input buffer (input_output_aliases);
    # there is nothing to compute and nothing to move.
    del x_ref, o_ref


def _identity_alias(x):
    return pl.pallas_call(
        _identity_noop_kernel,
        out_shape=jax.ShapeDtypeStruct(x.shape, x.dtype),
        in_specs=[pl.BlockSpec(memory_space=pl.ANY)],   # stay in HBM, no auto-DMA
        out_specs=pl.BlockSpec(memory_space=pl.ANY),
        input_output_aliases={0: 0},                    # output == input buffer
    )(x)


# -----------------------------------------------------------------------------
# Secondary path: tiled physical copy (distinct output buffer / fallback).
# -----------------------------------------------------------------------------
def _identity_copy_kernel(x_ref, o_ref):
    # Whole-block pass-through: one full-width load, one full-width store.
    o_ref[...] = x_ref[...]


def _pick_lane_layout(n):
    """Factor flat length n into (rows, cols) with cols % 128 == 0 and, when
    possible, rows % 8 == 0 (fully unmasked (8, 128) f32 tiles)."""
    if n % 128 != 0:
        return None
    for cols in (2048, 1024, 512, 256, 128):
        if n % cols == 0 and (n // cols) % 8 == 0:
            return n // cols, cols
    for cols in (2048, 1024, 512, 256, 128):
        if n % cols == 0:
            return n // cols, cols
    return None


def identity_copy_forward(x, *, max_block_bytes=2 * 1024 * 1024):
    """Identity that materialises a fresh output buffer via a tiled copy."""
    orig_shape = x.shape
    n = int(x.size)
    flat = x.reshape(-1)
    itemsize = flat.dtype.itemsize
    layout = _pick_lane_layout(n)

    if layout is None:
        # Irregular total size: single full-extent block (legal via the
        # block-equals-full-array escape hatch).  Fine for small tensors.
        flat2 = flat.reshape(1, n)
        out = pl.pallas_call(
            _identity_copy_kernel,
            out_shape=jax.ShapeDtypeStruct(flat2.shape, flat2.dtype),
            in_specs=[pl.BlockSpec(flat2.shape, lambda: (0, 0))],
            out_specs=pl.BlockSpec(flat2.shape, lambda: (0, 0)),
        )(flat2)
        return out.reshape(orig_shape)

    rows, cols = layout
    flat2 = flat.reshape(rows, cols)

    # Rows per block: multiple of 8, one buffer <= max_block_bytes.  With the
    # default double buffering (in + out) that is <= ~4 * 2 MiB = 8 MiB VMEM:
    # safe on v5e (16 MiB scoped default), v7x (32 MiB) and in the measured
    # v6e copy-roofline sweet spot (~85% of HBM BW for tiles >= 512).
    rows_cap = max(8, (max_block_bytes // (cols * itemsize)) // 8 * 8)
    block_rows = min(rows, rows_cap)
    grid = (pl.cdiv(rows, block_rows),)

    out = pl.pallas_call(
        _identity_copy_kernel,
        out_shape=jax.ShapeDtypeStruct(flat2.shape, flat2.dtype),
        grid=grid,
        in_specs=[pl.BlockSpec((block_rows, cols), lambda i: (i, 0))],
        out_specs=pl.BlockSpec((block_rows, cols), lambda i: (i, 0)),
        compiler_params=pltpu.CompilerParams(dimension_semantics=("parallel",)),
        cost_estimate=pl.CostEstimate(
            flops=0, transcendentals=0, bytes_accessed=2 * n * itemsize),
    )(flat2)
    return out.reshape(orig_shape)


# -----------------------------------------------------------------------------
# Public forward.
# -----------------------------------------------------------------------------
def identity_forward(x):
    """Identity forward: returns a tensor equal to `x` (same shape/dtype)."""
    try:
        return _identity_alias(x)
    except Exception:
        # Portability fallback: if the aliased no-op / ANY-memory-space path is
        # rejected by the installed jax/libtpu, use the tiled physical copy.
        return identity_copy_forward(x)


if __name__ == "__main__":
    # Small shapes consistent with the module's typical use: (N, C, H, W).
    N, C, H, W = 2, 4, 16, 16
    key = jax.random.PRNGKey(0)
    x = jax.random.normal(key, (N, C, H, W), jnp.float32)

    # Primary (zero-copy, aliased) path.
    out = jax.block_until_ready(identity_forward(x))
    assert out.shape == x.shape, out.shape
    assert out.dtype == x.dtype, out.dtype
    assert bool(jnp.array_equal(out, x)), float(jnp.max(jnp.abs(out - x)))

    # Secondary (tiled physical copy) path.
    out_copy = jax.block_until_ready(identity_copy_forward(x))
    assert out_copy.shape == x.shape, out_copy.shape
    assert out_copy.dtype == x.dtype, out_copy.dtype
    assert bool(jnp.array_equal(out_copy, x)), float(jnp.max(jnp.abs(out_copy - x)))

    print("KERNEL_OK")
</pallas_src>

<mosaic_0001>
module attributes {stable_mosaic.version = 11 : i64} {
  func.func @_identity_noop_kernel(%arg0: memref<2x4x16x16xf32, #tpu.memory_space<any>>, %arg1: memref<2x4x16x16xf32, #tpu.memory_space<any>>) attributes {dimension_semantics = [], scalar_prefetch = 0 : i64, scratch_operands = 0 : i64, tpu.core_type = #tpu.core_type<tc>} {
    return
  }
}

module attributes {stable_mosaic.version = 11 : i64} {
  func.func @_identity_copy_kernel(%arg0: i32, %arg1: memref<8x256xf32, #tpu.memory_space<vmem>>, %arg2: memref<8x256xf32, #tpu.memory_space<vmem>>) attributes {dimension_semantics = [#tpu.dimension_semantics<parallel>], iteration_bounds = array<i64: 1>, scalar_prefetch = 0 : i64, scratch_operands = 0 : i64, tpu.core_type = #tpu.core_type<tc>, window_params = [{transform_indices = @transform_0, window_bounds = array<i64: 8, 256>}, {transform_indices = @transform_1, window_bounds = array<i64: 8, 256>}]} {
    %c0 = arith.constant 0 : index
    %c0_0 = arith.constant 0 : index
    %0 = vector.load %arg1[%c0, %c0_0] : memref<8x256xf32, #tpu.memory_space<vmem>>, vector<8x256xf32>
    %c0_1 = arith.constant 0 : index
    %c0_2 = arith.constant 0 : index
    %1 = vector.load %arg2[%c0_1, %c0_2] : memref<8x256xf32, #tpu.memory_space<vmem>>, vector<8x256xf32>
    tpu.vector_store %arg2[%c0_1, %c0_2], %0 {strides = array<i32>} : memref<8x256xf32, #tpu.memory_space<vmem>>, vector<8x256xf32>,
    return
  }
  func.func @transform_0(%arg0: i32) -> (i32, i32) {
    %c0_i32 = arith.constant 0 : i32
    %c0_i32_0 = arith.constant 0 : i32
    return %arg0, %c0_i32 : i32, i32
  }
  func.func @transform_1(%arg0: i32) -> (i32, i32) {
    %c0_i32 = arith.constant 0 : i32
    %c0_i32_0 = arith.constant 0 : i32
    return %arg0, %c0_i32 : i32, i32
  }
}

</mosaic_0001>

<bundles_post_ra>
// kernel: tpu_custom_call.1
= control target key start
LH: loop header
LB: loop body
LE: loop exit
PB: predicated region body
PF: predicated region fallthrough
CT: control target
= control target key end

     0   :  { %s16_s0 = inlined_call_operand.hbm [shape: f32[2,4,16,16], index: 0, kind: input, shape index: {}, may-alias: {0,1}]   ;;  %s17_s1 = inlined_call_operand.hbm [shape: f32[2,4,16,16], index: 1, kind: output, shape index: {}, may-alias: {0,1}]  }

// kernel: tpu_custom_call.1
= control target key start
LH: loop header
LB: loop body
LE: loop exit
PB: predicated region body
PF: predicated region fallthrough
CT: control target
= control target key end

     0   :  { %6 = vsyncpa [#allocation3], 0  ;;  %s126_s0 = inlined_call_operand.hbm [shape: f32[8,256], index: 0, kind: input, shape index: {}]   ;;  %s127_s1 = inlined_call_operand.hbm [shape: f32[8,256], index: 1, kind: output, shape index: {}]  }
   0x1   :  { %7 = vsyncpa [#allocation4], 0  ;;  %s90_s6 = smov [#allocation2]   ;;  %s42_s10 = scalar_lea.hbm %s126_s0, 256 }
   0x2   :  { %s14_s7 = sshll.u32 %s90_s6, 4  ;;  %p43_p0 = scmp.ne.s32.totalorder %s126_s0, %s42_s10  ;;  %s15_s7 = int_to_ptr.vmem [resolvable:$true] %s14_s7 }
   0x3   :  { %p46_p1 = scmp.lt.u32.totalorder %s42_s10, %s126_s0 }
   0x5   :  { %p48_p2 = pnand %p46_p1, %p43_p0 }
   0x7   :  { %51 = shalt.err (!%p48_p2)
}
   0x8   :  { %s52_s15 = scalar_lea.vmem %s15_s7, 256  ;;  %p57_p4 = scmp.lt.s32.totalorder %s15_s7, %s15_s7 }
   0x9   :  { %p53_p3 = scmp.ne.s32.totalorder %s15_s7, %s52_s15  ;;  %p58_p5 = scmp.lt.s32.totalorder %s52_s15, %s52_s15 }
   0xb   :  { %p59_p6 = por %p58_p5, %p57_p4 }
   0xd   :  { %p60_p7 = pnand %p59_p6, %p53_p3 }
   0xf   :  { %63 = shalt.err (!%p60_p7)
}
  0x10   :  { %17 = dma.hbm_to_vmem [thread:$0]  %s126_s0, 256, %s15_s7, [#allocation3]  }
  0x11   :  { %86 = dma.done.wait [#allocation3], 256  }
  0x12   :  { %87 = vsyncadd [#allocation3], 4294967040  ;;  %s91_s18 = smov [#allocation5]   ;;  %v21_v0 = vld [vmem:[#allocation2] sm:$0xff]  ;;  %v22_v1 = vld [vmem:[#allocation2 + $0x8] sm:$0xff] }
  0x13   :  { %s31_s19 = sshll.u32 %s91_s18, 4  ;;  %23 = vst [vmem:[#allocation5] sm:$0xff] %v21_v0  ;;  %24 = vst [vmem:[#allocation5 + $0x8] sm:$0xff] %v22_v1  ;;  %s32_s19 = int_to_ptr.vmem [resolvable:$true] %s31_s19 }
  0x14   :  { %s64_s20 = scalar_lea.vmem %s32_s19, 256  ;;  %p69_p9 = scmp.lt.s32.totalorder %s32_s19, %s32_s19 }
  0x15   :  { %p65_p8 = scmp.ne.s32.totalorder %s32_s19, %s64_s20  ;;  %p70_p10 = scmp.lt.s32.totalorder %s64_s20, %s64_s20 }
  0x17   :  { %p71_p11 = por %p70_p10, %p69_p9 }
  0x19   :  { %p72_p12 = pnand %p71_p11, %p65_p8 }
  0x1b   :  { %75 = shalt.err (!%p72_p12)
}
  0x1c   :  { %s76_s0 = scalar_lea.hbm %s127_s1, 256 }
  0x1d   :  { %p77_p13 = scmp.ne.s32.totalorder %s127_s1, %s76_s0  ;;  %p80_p0 = scmp.lt.u32.totalorder %s76_s0, %s127_s1 }
  0x1f   :  { %p82_p1 = pnand %p80_p0, %p77_p13 }
  0x21   :  { %85 = shalt.err (!%p82_p1)
}
  0x22   :  { %34 = dma.vmem_to_hbm [thread:$0]  %s32_s19, 256, %s127_s1, [#allocation4]  }
  0x23   :  { %88 = dma.done.wait [#allocation4], 256  }
  0x24   :  { %89 = vsyncadd [#allocation4], 4294967040 }
  0x25   :  { %38 = vsyncpa [#allocation3], 1 }
  0x26   :  { %39 = vsyncpa [#allocation4], 1 }

</bundles_post_ra>
